<compile_context>
chip_gen: v7x
topology: tpu7x:2x2x1
jax: 0.10.0
libtpu: 0.0.40
codegen_flags: <defaults>
</compile_context>

<pallas_src>
import jax
import jax.numpy as jnp
from jax.experimental import pallas as pl
from jax.experimental.pallas import tpu as pltpu

IN_FEATURES = 31
K_PAD = 32          # layer-1 contraction padded 31 -> 32
H1 = 64
H2 = 32
DEFAULT_TILE_B = 2048   # multiple of 128 -> lane-dense output blocks


def _round_up(x, m):
    return (x + m - 1) // m * m


def simplenn_kernel(x_ref, w1_ref, b1_ref, w2_ref, b2_ref, w3_ref, b3_ref,
                    o_ref):
    # x_ref: (TILE_B, 32) bf16 | w*: bf16 | b1/b2: (1,H) f32 | b3: (1,1) SMEM f32
    x = x_ref[...]

    # Layer 1: (TILE_B, 32) @ (32, 64) -> f32 accum; bias + ReLU in f32.
    h1 = jnp.dot(x, w1_ref[...], preferred_element_type=jnp.float32)
    h1 = jnp.maximum(h1 + b1_ref[...], 0.0)

    # Layer 2: (TILE_B, 64) @ (64, 32) -> f32 accum; bias + ReLU in f32.
    h2 = jnp.dot(h1.astype(jnp.bfloat16), w2_ref[...],
                 preferred_element_type=jnp.float32)
    h2 = jnp.maximum(h2 + b2_ref[...], 0.0)

    # Layer 3 (transposed for a lane-dense output block):
    #   contract w3 (32, 1) axis 0 with h2 (TILE_B, 32) axis 1 -> (1, TILE_B).
    out_t = jax.lax.dot_general(
        w3_ref[...], h2.astype(jnp.bfloat16),
        dimension_numbers=(((0,), (1,)), ((), ())),
        preferred_element_type=jnp.float32)
    out_t = jnp.maximum(out_t + b3_ref[0, 0], 0.0)
    o_ref[...] = out_t.astype(o_ref.dtype)


def simplenn_forward(x, params, tile_b=DEFAULT_TILE_B):
    """x: (B, 31) float32. Returns (B, 1) float32."""
    w1, b1, w2, b2, w3, b3 = params
    B = x.shape[0]

    # One-time wrapper-side prep: pad K 31->32, cast MXU operands to bf16.
    x_p = jnp.pad(x, ((0, 0), (0, K_PAD - IN_FEATURES))).astype(jnp.bfloat16)
    w1_p = jnp.pad(w1, ((0, K_PAD - IN_FEATURES), (0, 0))).astype(jnp.bfloat16)
    w2_b = w2.astype(jnp.bfloat16)
    w3_b = w3.astype(jnp.bfloat16)
    b1_f = b1.astype(jnp.float32)
    b2_f = b2.astype(jnp.float32)
    b3_s = b3.reshape(1, 1).astype(jnp.float32)

    # Batch tile: either one full (8-aligned) block, or a multiple-of-128 tile.
    if B <= tile_b:
        tile = _round_up(B, 8)
    else:
        tile = tile_b
    b_pad = _round_up(B, tile)
    if b_pad != B:
        x_p = jnp.pad(x_p, ((0, b_pad - B), (0, 0)))
    grid = (b_pad // tile,)

    # Explicit VMEM budget (generous margin, capped well below v7x's 64 MiB).
    vmem_bytes = (2 * tile * K_PAD * 2          # double-buffered bf16 x tile
                  + tile * (H1 + H2) * 4        # f32 activations
                  + 2 * tile * 4                # double-buffered out tile
                  + 64 * 1024)                  # resident weights + slack
    vmem_limit = int(min(max(4 * vmem_bytes, 8 << 20), 32 << 20))

    out_t = pl.pallas_call(
        simplenn_kernel,
        out_shape=jax.ShapeDtypeStruct((1, b_pad), jnp.float32),
        grid=grid,
        in_specs=[
            pl.BlockSpec((tile, K_PAD), lambda i: (i, 0)),   # x: pipelined
            pl.BlockSpec((K_PAD, H1), lambda i: (0, 0)),     # w1: resident
            pl.BlockSpec((1, H1), lambda i: (0, 0)),         # b1: resident
            pl.BlockSpec((H1, H2), lambda i: (0, 0)),        # w2: resident
            pl.BlockSpec((1, H2), lambda i: (0, 0)),         # b2: resident
            pl.BlockSpec((H2, 1), lambda i: (0, 0)),         # w3: resident
            pl.BlockSpec(memory_space=pltpu.MemorySpace.SMEM),  # b3 scalar
        ],
        out_specs=pl.BlockSpec((1, tile), lambda i: (0, i)),  # lane-dense
        compiler_params=pltpu.CompilerParams(
            dimension_semantics=("parallel",),
            vmem_limit_bytes=vmem_limit,
        ),
    )(x_p, w1_p, b1_f, w2_b, b2_f, w3_b, b3_s)

    # Back to the module's (B, 1) layout; drop batch padding.
    return out_t[0, :B].reshape(B, 1)


def init_params(key):
    """Mimics nn.Linear default init (uniform +/- 1/sqrt(fan_in)).

    Weights stored (in_features, out_features); biases (1, out_features).
    """
    def linear(k, fan_in, fan_out):
        kw, kb = jax.random.split(k)
        bound = 1.0 / jnp.sqrt(float(fan_in))
        w = jax.random.uniform(kw, (fan_in, fan_out), jnp.float32,
                               minval=-bound, maxval=bound)
        b = jax.random.uniform(kb, (1, fan_out), jnp.float32,
                               minval=-bound, maxval=bound)
        return w, b

    k1, k2, k3 = jax.random.split(key, 3)
    w1, b1 = linear(k1, IN_FEATURES, H1)
    w2, b2 = linear(k2, H1, H2)
    w3, b3 = linear(k3, H2, 1)
    return (w1, b1, w2, b2, w3, b3)


def reference_forward(x, params):
    w1, b1, w2, b2, w3, b3 = params
    h = jnp.maximum(x @ w1 + b1, 0.0)
    h = jnp.maximum(h @ w2 + b2, 0.0)
    h = jnp.maximum(h @ w3 + b3, 0.0)
    return h


if __name__ == "__main__":
    key = jax.random.PRNGKey(0)
    kx, kx2, kp = jax.random.split(key, 3)
    params = init_params(kp)

    # Small single-block case (matches the module's toy usage).
    B = 8
    x = jax.random.normal(kx, (B, IN_FEATURES), jnp.float32)
    out = jax.block_until_ready(simplenn_forward(x, params))
    ref = reference_forward(x, params)
    assert out.shape == (B, 1), out.shape
    # bf16 MXU operands -> loosened tolerance vs f32 reference.
    assert jnp.allclose(out, ref, atol=2e-2, rtol=2e-2), "mismatch (B=8)"

    # Small multi-tile case to exercise the batch grid + padding path.
    B2 = 300
    x2 = jax.random.normal(kx2, (B2, IN_FEATURES), jnp.float32)
    out2 = jax.block_until_ready(simplenn_forward(x2, params, tile_b=128))
    ref2 = reference_forward(x2, params)
    assert out2.shape == (B2, 1), out2.shape
    assert jnp.allclose(out2, ref2, atol=2e-2, rtol=2e-2), "mismatch (B=300)"

    print("KERNEL_OK")
</pallas_src>

<mosaic_0001>
module attributes {stable_mosaic.version = 11 : i64} {
  func.func @simplenn_kernel(%arg0: i32, %arg1: memref<8x32xbf16, #tpu.memory_space<vmem>>, %arg2: memref<32x64xbf16, #tpu.memory_space<vmem>>, %arg3: memref<1x64xf32, #tpu.memory_space<vmem>>, %arg4: memref<64x32xbf16, #tpu.memory_space<vmem>>, %arg5: memref<1x32xf32, #tpu.memory_space<vmem>>, %arg6: memref<32x1xbf16, #tpu.memory_space<vmem>>, %arg7: memref<1x1xf32, #tpu.memory_space<smem>>, %arg8: memref<1x8xf32, #tpu.memory_space<vmem>>) attributes {dimension_semantics = [#tpu.dimension_semantics<parallel>], iteration_bounds = array<i64: 1>, scalar_prefetch = 0 : i64, scratch_operands = 0 : i64, tpu.core_type = #tpu.core_type<tc>, window_params = [{transform_indices = @transform_0, window_bounds = array<i64: 8, 32>}, {pipeline_mode = #tpu.pipeline_mode<synchronous>, transform_indices = @transform_1, window_bounds = array<i64: 32, 64>}, {pipeline_mode = #tpu.pipeline_mode<synchronous>, transform_indices = @transform_2, window_bounds = array<i64: 1, 64>}, {pipeline_mode = #tpu.pipeline_mode<synchronous>, transform_indices = @transform_3, window_bounds = array<i64: 64, 32>}, {pipeline_mode = #tpu.pipeline_mode<synchronous>, transform_indices = @transform_4, window_bounds = array<i64: 1, 32>}, {pipeline_mode = #tpu.pipeline_mode<synchronous>, transform_indices = @transform_5, window_bounds = array<i64: 32, 1>}, {transform_indices = @transform_6, window_bounds = array<i64: 1, 1>}, {transform_indices = @transform_7, window_bounds = array<i64: 1, 8>}]} {
    %c0 = arith.constant 0 : index
    %c0_0 = arith.constant 0 : index
    %0 = vector.load %arg1[%c0, %c0_0] : memref<8x32xbf16, #tpu.memory_space<vmem>>, vector<8x32xbf16>
    %c0_1 = arith.constant 0 : index
    %c0_2 = arith.constant 0 : index
    %1 = vector.load %arg2[%c0_1, %c0_2] : memref<32x64xbf16, #tpu.memory_space<vmem>>, vector<32x64xbf16>
    %cst = arith.constant dense<0.000000e+00> : vector<8x64xf32>
    %2 = tpu.matmul %0, %1, %cst {dimension_numbers = #tpu.dot_dimension_numbers<[1], [0], [0], [1], [0, 0, 1, 1], [], []>} : vector<8x32xbf16>, vector<32x64xbf16>, vector<8x64xf32> -> vector<8x64xf32>
    %c0_3 = arith.constant 0 : index
    %c0_4 = arith.constant 0 : index
    %3 = vector.load %arg3[%c0_3, %c0_4] : memref<1x64xf32, #tpu.memory_space<vmem>>, vector<1x64xf32>
    %4 = vector.broadcast %3 : vector<1x64xf32> to vector<8x64xf32>
    %5 = arith.addf %2, %4 : vector<8x64xf32>
    %cst_5 = arith.constant 0.000000e+00 : f32
    %6 = vector.broadcast %cst_5 : f32 to vector<8x64xf32>
    %7 = arith.maximumf %5, %6 : vector<8x64xf32>
    %8 = arith.truncf %7 : vector<8x64xf32> to vector<8x64xbf16>
    %c0_6 = arith.constant 0 : index
    %c0_7 = arith.constant 0 : index
    %9 = vector.load %arg4[%c0_6, %c0_7] : memref<64x32xbf16, #tpu.memory_space<vmem>>, vector<64x32xbf16>
    %cst_8 = arith.constant dense<0.000000e+00> : vector<8x32xf32>
    %10 = tpu.matmul %8, %9, %cst_8 {dimension_numbers = #tpu.dot_dimension_numbers<[1], [0], [0], [1], [0, 0, 1, 1], [], []>} : vector<8x64xbf16>, vector<64x32xbf16>, vector<8x32xf32> -> vector<8x32xf32>
    %c0_9 = arith.constant 0 : index
    %c0_10 = arith.constant 0 : index
    %11 = vector.load %arg5[%c0_9, %c0_10] : memref<1x32xf32, #tpu.memory_space<vmem>>, vector<1x32xf32>
    %12 = vector.broadcast %11 : vector<1x32xf32> to vector<8x32xf32>
    %13 = arith.addf %10, %12 : vector<8x32xf32>
    %cst_11 = arith.constant 0.000000e+00 : f32
    %14 = vector.broadcast %cst_11 : f32 to vector<8x32xf32>
    %15 = arith.maximumf %13, %14 : vector<8x32xf32>
    %c0_12 = arith.constant 0 : index
    %c0_13 = arith.constant 0 : index
    %16 = vector.load %arg6[%c0_12, %c0_13] : memref<32x1xbf16, #tpu.memory_space<vmem>>, vector<32x1xbf16>
    %17 = arith.truncf %15 : vector<8x32xf32> to vector<8x32xbf16>
    %cst_14 = arith.constant dense<0.000000e+00> : vector<1x8xf32>
    %18 = tpu.matmul %16, %17, %cst_14 {dimension_numbers = #tpu.dot_dimension_numbers<[0], [1], [1], [0], [0, 1, 1, 0], [], []>} : vector<32x1xbf16>, vector<8x32xbf16>, vector<1x8xf32> -> vector<1x8xf32>
    %c0_15 = arith.constant 0 : index
    %c0_16 = arith.constant 0 : index
    %19 = memref.load %arg7[%c0_15, %c0_16] : memref<1x1xf32, #tpu.memory_space<smem>>
    %20 = vector.broadcast %19 : f32 to vector<1x8xf32>
    %21 = arith.addf %18, %20 : vector<1x8xf32>
    %cst_17 = arith.constant 0.000000e+00 : f32
    %22 = vector.broadcast %cst_17 : f32 to vector<1x8xf32>
    %23 = arith.maximumf %21, %22 : vector<1x8xf32>
    %c0_18 = arith.constant 0 : index
    %c0_19 = arith.constant 0 : index
    %24 = vector.load %arg8[%c0_18, %c0_19] : memref<1x8xf32, #tpu.memory_space<vmem>>, vector<1x8xf32>
    tpu.vector_store %arg8[%c0_18, %c0_19], %23 {strides = array<i32>} : memref<1x8xf32, #tpu.memory_space<vmem>>, vector<1x8xf32>,
    return
  }
  func.func @transform_0(%arg0: i32) -> (i32, i32) {
    %c0_i32 = arith.constant 0 : i32
    %c0_i32_0 = arith.constant 0 : i32
    return %arg0, %c0_i32 : i32, i32
  }
  func.func @transform_1(%arg0: i32) -> (i32, i32) {
    %c0_i32 = arith.constant 0 : i32
    %c0_i32_0 = arith.constant 0 : i32
    %c0_i32_1 = arith.constant 0 : i32
    return %c0_i32, %c0_i32_0 : i32, i32
  }
  func.func @transform_2(%arg0: i32) -> (i32, i32) {
    %c0_i32 = arith.constant 0 : i32
    %c0_i32_0 = arith.constant 0 : i32
    %c0_i32_1 = arith.constant 0 : i32
    return %c0_i32, %c0_i32_0 : i32, i32
  }
  func.func @transform_3(%arg0: i32) -> (i32, i32) {
    %c0_i32 = arith.constant 0 : i32
    %c0_i32_0 = arith.constant 0 : i32
    %c0_i32_1 = arith.constant 0 : i32
    return %c0_i32, %c0_i32_0 : i32, i32
  }
  func.func @transform_4(%arg0: i32) -> (i32, i32) {
    %c0_i32 = arith.constant 0 : i32
    %c0_i32_0 = arith.constant 0 : i32
    %c0_i32_1 = arith.constant 0 : i32
    return %c0_i32, %c0_i32_0 : i32, i32
  }
  func.func @transform_5(%arg0: i32) -> (i32, i32) {
    %c0_i32 = arith.constant 0 : i32
    %c0_i32_0 = arith.constant 0 : i32
    %c0_i32_1 = arith.constant 0 : i32
    return %c0_i32, %c0_i32_0 : i32, i32
  }
  func.func @transform_6(%arg0: i32) -> (i32, i32) {
    %c0_i32 = arith.constant 0 : i32
    %c0_i32_0 = arith.constant 0 : i32
    %c0_i32_1 = arith.constant 0 : i32
    return %c0_i32, %c0_i32_0 : i32, i32
  }
  func.func @transform_7(%arg0: i32) -> (i32, i32) {
    %c0_i32 = arith.constant 0 : i32
    %c0_i32_0 = arith.constant 0 : i32
    return %c0_i32, %arg0 : i32, i32
  }
}

</mosaic_0001>

<bundles_post_ra>
// kernel: tpu_custom_call.1
= control target key start
LH: loop header
LB: loop body
LE: loop exit
PB: predicated region body
PF: predicated region fallthrough
CT: control target
= control target key end

     0   :  { %v366_v1 = vmov 0.0   ;;  %vm367_vm0 = vmmov 0   ;;  %vm53_vm1 = vcmask 261120   ;;  %s463_s0 = inlined_call_operand.vmem [shape: bf16[8,32], index: 0, kind: input, shape index: {}]   ;;  %s464_s1 = inlined_call_operand.vmem [shape: bf16[32,64], index: 1, kind: input, shape index: {}]   ;;  %s465_s2 = inlined_call_operand.vmem [shape: f32[1,64], index: 2, kind: input, shape index: {}]   ;;  %s466_s3 = inlined_call_operand.vmem [shape: bf16[64,32], index: 3, kind: input, shape index: {}]   ;;  %s467_s4 = inlined_call_operand.vmem [shape: f32[1,32], index: 4, kind: input, shape index: {}]   ;;  %s468_s5 = inlined_call_operand.vmem [shape: bf16[32,1], index: 5, kind: input, shape index: {}]   ;;  %s469_s6 = inlined_call_operand.<no memory space> [shape: f32[1,1], index: 6, kind: input, shape index: {}]   ;;  %s470_s7 = inlined_call_operand.hbm [shape: f32[1,8], index: 7, kind: output, shape index: {}]  }
   0x1   :  { %v334_v0 = vld [vmem:[%s464_s1] sm:$0xff]   ;;  %304 = vmatprep.subr.bf16.mxu0 %v366_v1  ;;  %312 = vmatprep.subr.bf16.mxu1 %v366_v1  ;;  %v335_v2 = vld [vmem:[%s464_s1 + $0x8] sm:$0xff]  }
   0x2   :  { %305 = vmatpush3.bf16.msra.mxu0 %v334_v0  ;;  %308 = vmatprep.mubr.msk.bf16.mxu0 %vm367_vm0, %v366_v1  ;;  %v336_v3 = vld [vmem:[%s466_s3] sm:$0xff]   ;;  %v337_v5 = vld [vmem:[%s466_s3 + $0x8] sm:$0xff]  }
   0x3   :  { %306 = vmatprep.subr.bf16.mxu0 %v366_v1  ;;  %320 = vmatprep.mubr.msk.bf16.mxu1 %vm367_vm0, %v366_v1  ;;  %v29_v4 = vld [vmem:[%s463_s0] sm:$0xf] }
   0x4   :  { %313 = vmatpush3.bf16.msra.mxu1 %v336_v3 }
   0x5   :  { %314 = vmatprep.subr.bf16.mxu1 %v366_v1 }
   0x6   :  { %307 = vmatpush3.bf16.msra.mxu0 %v335_v2 }
   0x7   :  { %324 = vmatprep.subr.bf16.mxu0 %v366_v1 }
   0x8   :  { %13 = vsyncpa [#allocation4], 0  ;;  %315 = vmatpush3.bf16.msra.mxu1 %v337_v5  ;;  %v338_v6 = vld [vmem:[%s466_s3 + $0x10] sm:$0xff]   ;;  %v339_v7 = vld [vmem:[%s466_s3 + $0x18] sm:$0xff]   ;;  %vm138_vm2 = vcmask 523264   ;;  %v189_v28 = vstv %s469_s6  ;;  %s368_s20 = smov [#allocation3]  }
   0x9   :  { %309 = vmatmul.mubr.msk.bf16.vlgmr.msra.gmra.mrb[0].mxu0 %vm53_vm1, %v29_v4  ;;  %316 = vmatprep.subr.bf16.mxu1 %v366_v1  ;;  %v340_v8 = vld [vmem:[%s468_s5] sm:$0xff]   ;;  %v341_v9 = vld [vmem:[%s468_s5 + $0x8] sm:$0xff]   ;;  %vm265_vm3 = vcmask 57344  }
   0xa   :  { %326 = vmatprep.mubr.msk.bf16.mxu0 %vm367_vm0, %v366_v1  ;;  %202 = vxpose.xlu0.c.b16.start [1/2] (short) (narrow) %v340_v8, 16  ;;  %v281_v10 = vld [vmem:[%s465_s2] ss:$0 sm:$0xff] }
   0xb   :  { %v285_v18 = vld [vmem:[%s467_s4] ss:$0 sm:$0xff]  ;;  %s273_s4 = sshll.u32 %s368_s20, 4  ;;  %s274_s4 = int_to_ptr.vmem [resolvable:$true] %s273_s4 }
   0xc   :  { %317 = vmatpush3.bf16.msra.mxu1 %v338_v6  ;;  %s342_s21 = scalar_lea.vmem %s274_s4, 16  ;;  %s346_s22 = scalar_lea.vmem %s274_s4, 32 }
   0xd   :  { %318 = vmatprep.subr.bf16.mxu1 %v366_v1  ;;  %p343_p0 = scmp.ne.s32.totalorder %s274_s4, %s342_s21  ;;  %p347_p1 = scmp.lt.s32.totalorder %s274_s4, %s274_s4 }
   0xe   :  { %203 = vxpose.xlu0.c.b16.end [2/2] (short) (narrow) %v341_v9, 16  ;;  %p348_p2 = scmp.lt.s32.totalorder %s346_s22, %s342_s21 }
  0x10   :  { %319 = vmatpush3.bf16.msra.mxu1 %v339_v7  ;;  %p349_p3 = por %p348_p2, %p347_p1 }
  0x12   :  { %p350_p4 = pnand %p349_p3, %p343_p0 }
  0x70   :  { %v210_v27 = vpop.trf.xlu0 }
  0xdc   :  { %v91_v11 = vpop.f32.mrb[0].mxu0 }
  0xdd   :  { %v92_v12 = vadd.f32 %v281_v10, %v91_v11  ;;  %v310_v13 = vpop.f32.mrb[1].mxu0 }
  0xde   :  { %v94_v14 = vpop.f32.mrb[2].mxu0 }
  0xdf   :  { %v97_v15 = vmax.f32 %v92_v12, 0.0  ;;  %v311_v16 = vpop.f32.mrb[3].mxu0 }
  0xe1   :  { %v98_v17 = vpack.c.bf16 %v97_v15, %v97_v15 }
  0xe3   :  { %321 = vmatmul.mubr.msk.bf16.vlgmr.msra.gmra.mrb[0].mxu1 %vm138_vm2, %v98_v17 }
 0x1b6   :  { %v176_v19 = vpop.f32.mrb[0].mxu1 }
 0x1b7   :  { %v177_v20 = vadd.f32 %v285_v18, %v176_v19  ;;  %v322_v21 = vpop.f32.mrb[1].mxu1 }
 0x1b8   :  { %v179_v22 = vpop.f32.mrb[2].mxu1 }
 0x1b9   :  { %v182_v23 = vmax.f32 %v177_v20, 0.0  ;;  %v323_v24 = vpop.f32.mrb[3].mxu1 }
 0x1bb   :  { %v187_v25 = vpack.c.bf16 %v182_v23, %v182_v23 }
 0x1bd   :  { %v222_v26 = vsel %vm53_vm1, %v187_v25, 0 }
 0x1be   :  { %325 = vmatpush3.bf16.xpose.msra.mxu0 %v222_v26 }
 0x1c5   :  { %327 = vmatmul.mubr.msk.bf16.vlgmr.msra.gmra.mrb[4].mxu0 %vm53_vm1, %v210_v27 }
 0x298   :  { %v258_v29 = vpop.f32.mrb[4].mxu0 }
 0x299   :  { %v259_v30 = vadd.f32 %v258_v29, %v189_v28  ;;  %v328_v31 = vpop.f32.mrb[5].mxu0 }
 0x29a   :  { %v261_v32 = vpop.f32.mrb[6].mxu0 }
 0x29b   :  { %v264_v33 = vmax.f32 %v259_v30, 0.0  ;;  %v329_v34 = vpop.f32.mrb[7].mxu0 }
 0x29d   :  { %266 = vst.msk [vmem:[#allocation3] sm:$0x1] %vm265_vm3, %v264_v33 }
 0x29e   :  { %353 = shalt.err (!%p350_p4)
}
 0x29f   :  { %s354_s24 = scalar_lea.hbm %s470_s7, 16 }
 0x2a0   :  { %p355_p5 = scmp.ne.s32.totalorder %s470_s7, %s354_s24  ;;  %p358_p6 = scmp.lt.u32.totalorder %s354_s24, %s470_s7 }
 0x2a2   :  { %p360_p7 = pnand %p358_p6, %p355_p5 }
 0x2a4   :  { %363 = shalt.err (!%p360_p7)
}
 0x2a5   :  { %276 = dma.vmem_to_hbm [thread:$0]  %s274_s4, 16, %s470_s7, [#allocation4]  }
 0x2a6   :  { %364 = dma.done.wait [#allocation4], 16  }
 0x2a7   :  { %365 = vsyncadd [#allocation4], 4294967280 }
 0x2a8   :  { %280 = vsyncpa [#allocation4], 1 }

</bundles_post_ra>
